<compile_context>
chip_gen: v7x
topology: tpu7x:2x2x1
jax: 0.10.0
libtpu: 0.0.40
codegen_flags: <defaults>
</compile_context>

<pallas_src>
import jax
import jax.numpy as jnp
from jax.experimental import pallas as pl
from jax.experimental.pallas import tpu as pltpu

F_IN = 31    # feature / LSTM input size
H = 31       # LSTM hidden size
OUT = 7      # linear output size
K1, S1 = 4, 2
K2, S2 = 8, 4
REP = 8      # repeat_interleave factor

FP = 32                       # padded feature dim
HP = 32                       # padded per-gate hidden dim
GP = 4 * HP                   # 128: all 4 gates concatenated (lane-dense)
K_EFF = (K2 - 1) * S1 + K1    # 18-tap fused FIR
S_EFF = S1 * S2               # effective stride 8
KW = 5 * 128                  # 640: lane-padded im2col width (18*32=576 -> 640)
LOUT = 128                    # lane-padded linear output width


def _make_kernel(B, T2):
    """Fused (im2col'd conv + input-proj) -> LSTM recurrence -> linear kernel."""

    def kernel(xw_ref, wbig_ref, whh_ref, bg_ref, lw_ref, lb_ref, out_ref, hbuf):
        # ---- conv FIR + LSTM input projection + biases: ONE deep MXU matmul ----
        # (T2*B, 640) x (640, 128); conv bias folded into bg in prepare_params.
        zp_all = (jnp.dot(xw_ref[...], wbig_ref[...],
                          preferred_element_type=jnp.float32) + bg_ref[...])

        # ---- serial recurrence: single (B,32)x(32,128) dot per step ----
        # TODO(synk): convert to lax.fori_loop with a VMEM gate/h scratch once
        # T2 grows beyond a handful of steps (register-pressure scaling cliff).
        whh = whh_ref[...]
        h = jnp.zeros((B, HP), jnp.float32)
        c = jnp.zeros((B, HP), jnp.float32)
        for t in range(T2):
            g = zp_all[t * B:(t + 1) * B, :] + jnp.dot(
                h, whh, preferred_element_type=jnp.float32)
            # PyTorch gate order: i, f, g, o (static lane slices of width 32)
            i_g = jax.nn.sigmoid(g[:, 0 * HP:1 * HP])
            f_g = jax.nn.sigmoid(g[:, 1 * HP:2 * HP])
            g_g = jnp.tanh(g[:, 2 * HP:3 * HP])
            o_g = jax.nn.sigmoid(g[:, 3 * HP:4 * HP])
            c = f_g * c + i_g * g_g
            h = o_g * jnp.tanh(c)
            hbuf[t * B:(t + 1) * B, :] = h   # tiny masked stores; negligible at B=2

        # ---- final linear over all timesteps at once; lane-dense 128-wide store ----
        out_ref[...] = (jnp.dot(hbuf[...], lw_ref[...],
                                preferred_element_type=jnp.float32)
                        + lb_ref[...])

    return kernel


def model_forward(x, kp):
    # TODO(synk): at production shapes (B>>2) add a "parallel" batch grid axis
    # (v7x dual-TC) with per-block BlockSpecs for xw/out, and re-derive the
    # whole-array-in-VMEM assumption against v7x's 64 MiB VMEM; at these toy
    # shapes a single gridless invocation is well under limits.
    B, T, F = x.shape
    assert F == F_IN
    T1 = (T - K1) // S1 + 1
    T2 = (T1 - K2) // S2 + 1

    x_pad = jnp.pad(x.astype(jnp.float32), ((0, 0), (0, 0), (0, FP - F)))

    # im2col of the stride-8, 18-tap time windows (layout plumbing, not compute):
    # xw[t*B + b, m*FP + f] = x_pad[b, 8*t + m, f], lane-padded 576 -> 640.
    idx = jnp.arange(T2)[:, None] * S_EFF + jnp.arange(K_EFF)[None, :]   # (T2, K_EFF)
    xw = x_pad[:, idx, :]                                  # (B, T2, K_EFF, FP)
    xw = xw.transpose(1, 0, 2, 3).reshape(T2 * B, K_EFF * FP)
    xw = jnp.pad(xw, ((0, 0), (0, KW - K_EFF * FP)))       # (T2*B, 640)

    vmem = pl.BlockSpec(memory_space=pltpu.MemorySpace.VMEM)

    out2d = pl.pallas_call(
        _make_kernel(B, T2),
        out_shape=jax.ShapeDtypeStruct((T2 * B, LOUT), jnp.float32),
        in_specs=[vmem,          # xw: im2col'd input windows (T2*B, 640)
                  vmem,          # W_big: fused conv x W_ih, packed (640, 128)
                  vmem,          # W_hh packed (32, 128)
                  vmem,          # combined gate bias + folded conv bias (1, 128)
                  vmem, vmem],   # linear W^T lane-padded (32, 128), bias (1, 128)
        out_specs=vmem,
        scratch_shapes=[pltpu.VMEM((T2 * B, HP), jnp.float32)],  # h buffer
    )(xw, kp['wbig'], kp['whh'], kp['bg'], kp['lw'], kp['lb'])

    y = out2d[:, :OUT].reshape(T2, B, OUT).transpose(1, 0, 2)   # (B, T2, OUT)
    return jnp.repeat(y, REP, axis=1)                           # == repeat_interleave(8, dim=1)


def init_params(key):
    """PyTorch-style uniform(-1/sqrt(fan), +1/sqrt(fan)) raw parameters."""
    ks = jax.random.split(key, 10)

    def u(k, shape, fan_in):
        b = 1.0 / float(fan_in) ** 0.5
        return jax.random.uniform(k, shape, jnp.float32, -b, b)

    return dict(
        w1=u(ks[0], (K1,), K1), b1=u(ks[1], (1,), K1),        # Conv2d(1,1,(4,1))
        w2=u(ks[2], (K2,), K2), b2=u(ks[3], (1,), K2),        # Conv2d(1,1,(8,1))
        w_ih=u(ks[4], (4 * H, F_IN), H), w_hh=u(ks[5], (4 * H, H), H),
        b_ih=u(ks[6], (4 * H,), H), b_hh=u(ks[7], (4 * H,), H),
        lin_w=u(ks[8], (OUT, H), H), lin_b=u(ks[9], (OUT,), H),
    )


def prepare_params(rp):
    """Fuse convs into the input projection, pack/pad everything lane-dense."""
    w1, b1, w2, b2 = rp['w1'], rp['b1'], rp['w2'], rp['b2']

    # conv2(conv1(x)) == 18-tap stride-8 FIR:
    #   w_eff[2j+i] += w2[j]*w1[i];  b_eff = b2 + b1*sum_j w2[j]
    w_eff = jnp.zeros((K_EFF,), jnp.float32)
    for j in range(K2):
        for i in range(K1):
            w_eff = w_eff.at[S1 * j + i].add(w2[j] * w1[i])
    b_eff = b2[0] + b1[0] * jnp.sum(w2)

    def pack_gates(W):                       # W: (4H, in_dim), PyTorch layout
        in_dim = W.shape[1]
        out = jnp.zeros((FP, GP), jnp.float32)
        for k in range(4):                   # gate order i, f, g, o
            out = out.at[:in_dim, k * HP:k * HP + H].set(W[k * H:(k + 1) * H, :].T)
        return out                           # padded rows/cols are zero

    wih = pack_gates(rp['w_ih'])             # (32, 128)
    whh = pack_gates(rp['w_hh'])             # (32, 128)

    # Fused conv+input-projection weight: W_big[m*32+f, :] = w_eff[m] * wih[f, :]
    wbig = (w_eff[:, None, None] * wih[None, :, :]).reshape(K_EFF * FP, GP)
    wbig = jnp.pad(wbig, ((0, KW - K_EFF * FP), (0, 0)))     # (640, 128)

    # Gate bias; fold conv bias through the 31 useful wih rows (row 31 is zero).
    bsum = rp['b_ih'] + rp['b_hh']
    bg = jnp.zeros((1, GP), jnp.float32)
    for k in range(4):
        bg = bg.at[0, k * HP:k * HP + H].set(bsum[k * H:(k + 1) * H])
    bg = bg + b_eff * jnp.sum(wih, axis=0, keepdims=True)

    # Linear: lane-pad output width 7 -> 128 so the kernel's store is unmasked.
    lw = jnp.zeros((HP, LOUT), jnp.float32).at[:H, :OUT].set(rp['lin_w'].T)
    lb = jnp.zeros((1, LOUT), jnp.float32).at[0, :OUT].set(rp['lin_b'])

    # TODO(synk): on v6e/v7x at production scale, cast wbig/whh/lw (and xw) to
    # bfloat16 while keeping preferred_element_type=f32 on every dot.
    return dict(wbig=wbig, whh=whh, bg=bg, lw=lw, lb=lb)


def reference(x, rp):
    """Pure-JAX reference with the exact PyTorch semantics (unfused convs)."""
    B, T, _ = x.shape
    T1 = (T - K1) // S1 + 1
    T2 = (T1 - K2) // S2 + 1
    c1 = jnp.stack([sum(rp['w1'][i] * x[:, S1 * to + i, :] for i in range(K1)) + rp['b1'][0]
                    for to in range(T1)], axis=1)
    z = jnp.stack([sum(rp['w2'][j] * c1[:, S2 * t + j, :] for j in range(K2)) + rp['b2'][0]
                   for t in range(T2)], axis=1)

    Wih, Whh = rp['w_ih'], rp['w_hh']
    bias = rp['b_ih'] + rp['b_hh']

    def step(carry, zt):
        h, c = carry
        gates = zt @ Wih.T + h @ Whh.T + bias
        i_g = jax.nn.sigmoid(gates[:, 0 * H:1 * H])
        f_g = jax.nn.sigmoid(gates[:, 1 * H:2 * H])
        g_g = jnp.tanh(gates[:, 2 * H:3 * H])
        o_g = jax.nn.sigmoid(gates[:, 3 * H:4 * H])
        c = f_g * c + i_g * g_g
        h = o_g * jnp.tanh(c)
        return (h, c), h

    (_, _), hs = jax.lax.scan(step, (jnp.zeros((B, H)), jnp.zeros((B, H))),
                              jnp.swapaxes(z, 0, 1))
    hs = jnp.swapaxes(hs, 0, 1)                 # (B, T2, H)
    y = hs @ rp['lin_w'].T + rp['lin_b']        # (B, T2, OUT)
    return jnp.repeat(y, REP, axis=1)           # == torch repeat_interleave(8, dim=1)


if __name__ == "__main__":
    # TODO(synk): torch.nn.utils.rnn.pack_sequence / PackedSequence has no Pallas
    # analogue; the forward pass itself consumes a dense (B, T, 31) tensor, which
    # is what we model here.
    key = jax.random.PRNGKey(0)
    kx, kp = jax.random.split(key)

    B, T = 2, 64                          # small shapes; F is fixed at 31 by the LSTM
    x = jax.random.normal(kx, (B, T, F_IN), jnp.float32)
    raw = init_params(kp)
    kparams = prepare_params(raw)

    out = jax.block_until_ready(model_forward(x, kparams))

    T1 = (T - K1) // S1 + 1
    T2 = (T1 - K2) // S2 + 1
    assert out.shape == (B, T2 * REP, OUT), out.shape

    ref = jax.block_until_ready(reference(x, raw))
    if not bool(jnp.allclose(out, ref, atol=2e-3, rtol=2e-3)):
        raise AssertionError("Pallas kernel output does not match JAX reference")

    print("KERNEL_OK")
</pallas_src>

<mosaic_0001>
module attributes {stable_mosaic.version = 11 : i64} {
  func.func @kernel(%arg0: memref<12x640xf32, #tpu.memory_space<vmem>>, %arg1: memref<640x128xf32, #tpu.memory_space<vmem>>, %arg2: memref<32x128xf32, #tpu.memory_space<vmem>>, %arg3: memref<1x128xf32, #tpu.memory_space<vmem>>, %arg4: memref<32x128xf32, #tpu.memory_space<vmem>>, %arg5: memref<1x128xf32, #tpu.memory_space<vmem>>, %arg6: memref<12x128xf32, #tpu.memory_space<vmem>>, %arg7: memref<12x32xf32, #tpu.memory_space<vmem>>) attributes {dimension_semantics = [], scalar_prefetch = 0 : i64, scratch_operands = 1 : i64, tpu.core_type = #tpu.core_type<tc>} {
    %c0 = arith.constant 0 : index
    %c0_0 = arith.constant 0 : index
    %0 = vector.load %arg0[%c0, %c0_0] : memref<12x640xf32, #tpu.memory_space<vmem>>, vector<12x640xf32>
    %c0_1 = arith.constant 0 : index
    %c0_2 = arith.constant 0 : index
    %1 = vector.load %arg1[%c0_1, %c0_2] : memref<640x128xf32, #tpu.memory_space<vmem>>, vector<640x128xf32>
    %cst = arith.constant dense<0.000000e+00> : vector<12x128xf32>
    %2 = tpu.matmul %0, %1, %cst {dimension_numbers = #tpu.dot_dimension_numbers<[1], [0], [0], [1], [0, 0, 1, 1], [], []>} : vector<12x640xf32>, vector<640x128xf32>, vector<12x128xf32> -> vector<12x128xf32>
    %c0_3 = arith.constant 0 : index
    %c0_4 = arith.constant 0 : index
    %3 = vector.load %arg3[%c0_3, %c0_4] : memref<1x128xf32, #tpu.memory_space<vmem>>, vector<1x128xf32>
    %4 = vector.broadcast %3 : vector<1x128xf32> to vector<12x128xf32>
    %5 = arith.addf %2, %4 : vector<12x128xf32>
    %c0_5 = arith.constant 0 : index
    %c0_6 = arith.constant 0 : index
    %6 = vector.load %arg2[%c0_5, %c0_6] : memref<32x128xf32, #tpu.memory_space<vmem>>, vector<32x128xf32>
    %cst_7 = arith.constant 0.000000e+00 : f32
    %7 = vector.broadcast %cst_7 : f32 to vector<2x32xf32>
    %cst_8 = arith.constant 0.000000e+00 : f32
    %8 = vector.broadcast %cst_8 : f32 to vector<2x32xf32>
    %9 = vector.extract_strided_slice %5 {offsets = [0, 0], sizes = [2, 128], strides = [1, 1]} : vector<12x128xf32> to vector<2x128xf32>
    %cst_9 = arith.constant dense<0.000000e+00> : vector<2x128xf32>
    %10 = tpu.matmul %7, %6, %cst_9 {dimension_numbers = #tpu.dot_dimension_numbers<[1], [0], [0], [1], [0, 0, 1, 1], [], []>} : vector<2x32xf32>, vector<32x128xf32>, vector<2x128xf32> -> vector<2x128xf32>
    %11 = arith.addf %9, %10 : vector<2x128xf32>
    %12 = vector.extract_strided_slice %11 {offsets = [0, 0], sizes = [2, 32], strides = [1, 1]} : vector<2x128xf32> to vector<2x32xf32>
    %13 = arith.negf %12 : vector<2x32xf32>
    %14 = math.exp %13 : vector<2x32xf32>
    %cst_10 = arith.constant 1.000000e+00 : f32
    %15 = vector.broadcast %cst_10 : f32 to vector<2x32xf32>
    %16 = arith.addf %15, %14 : vector<2x32xf32>
    %17 = arith.divf %15, %16 : vector<2x32xf32>
    %18 = vector.extract_strided_slice %11 {offsets = [0, 32], sizes = [2, 32], strides = [1, 1]} : vector<2x128xf32> to vector<2x32xf32>
    %19 = arith.negf %18 : vector<2x32xf32>
    %20 = math.exp %19 : vector<2x32xf32>
    %cst_11 = arith.constant 1.000000e+00 : f32
    %21 = vector.broadcast %cst_11 : f32 to vector<2x32xf32>
    %22 = arith.addf %21, %20 : vector<2x32xf32>
    %23 = arith.divf %21, %22 : vector<2x32xf32>
    %24 = vector.extract_strided_slice %11 {offsets = [0, 64], sizes = [2, 32], strides = [1, 1]} : vector<2x128xf32> to vector<2x32xf32>
    %25 = math.tanh %24 : vector<2x32xf32>
    %26 = vector.extract_strided_slice %11 {offsets = [0, 96], sizes = [2, 32], strides = [1, 1]} : vector<2x128xf32> to vector<2x32xf32>
    %27 = arith.negf %26 : vector<2x32xf32>
    %28 = math.exp %27 : vector<2x32xf32>
    %cst_12 = arith.constant 1.000000e+00 : f32
    %29 = vector.broadcast %cst_12 : f32 to vector<2x32xf32>
    %30 = arith.addf %29, %28 : vector<2x32xf32>
    %31 = arith.divf %29, %30 : vector<2x32xf32>
    %32 = arith.mulf %23, %8 : vector<2x32xf32>
    %33 = arith.mulf %17, %25 : vector<2x32xf32>
    %34 = arith.addf %32, %33 : vector<2x32xf32>
    %35 = math.tanh %34 : vector<2x32xf32>
    %36 = arith.mulf %31, %35 : vector<2x32xf32>
    %c0_13 = arith.constant 0 : index
    %c0_14 = arith.constant 0 : index
    %37 = vector.load %arg7[%c0_13, %c0_14] : memref<12x32xf32, #tpu.memory_space<vmem>>, vector<2x32xf32>
    tpu.vector_store %arg7[%c0_13, %c0_14], %36 {strides = array<i32>} : memref<12x32xf32, #tpu.memory_space<vmem>>, vector<2x32xf32>,
    %38 = vector.extract_strided_slice %5 {offsets = [2, 0], sizes = [2, 128], strides = [1, 1]} : vector<12x128xf32> to vector<2x128xf32>
    %cst_15 = arith.constant dense<0.000000e+00> : vector<2x128xf32>
    %39 = tpu.matmul %36, %6, %cst_15 {dimension_numbers = #tpu.dot_dimension_numbers<[1], [0], [0], [1], [0, 0, 1, 1], [], []>} : vector<2x32xf32>, vector<32x128xf32>, vector<2x128xf32> -> vector<2x128xf32>
    %40 = arith.addf %38, %39 : vector<2x128xf32>
    %41 = vector.extract_strided_slice %40 {offsets = [0, 0], sizes = [2, 32], strides = [1, 1]} : vector<2x128xf32> to vector<2x32xf32>
    %42 = arith.negf %41 : vector<2x32xf32>
    %43 = math.exp %42 : vector<2x32xf32>
    %cst_16 = arith.constant 1.000000e+00 : f32
    %44 = vector.broadcast %cst_16 : f32 to vector<2x32xf32>
    %45 = arith.addf %44, %43 : vector<2x32xf32>
    %46 = arith.divf %44, %45 : vector<2x32xf32>
    %47 = vector.extract_strided_slice %40 {offsets = [0, 32], sizes = [2, 32], strides = [1, 1]} : vector<2x128xf32> to vector<2x32xf32>
    %48 = arith.negf %47 : vector<2x32xf32>
    %49 = math.exp %48 : vector<2x32xf32>
    %cst_17 = arith.constant 1.000000e+00 : f32
    %50 = vector.broadcast %cst_17 : f32 to vector<2x32xf32>
    %51 = arith.addf %50, %49 : vector<2x32xf32>
    %52 = arith.divf %50, %51 : vector<2x32xf32>
    %53 = vector.extract_strided_slice %40 {offsets = [0, 64], sizes = [2, 32], strides = [1, 1]} : vector<2x128xf32> to vector<2x32xf32>
    %54 = math.tanh %53 : vector<2x32xf32>
    %55 = vector.extract_strided_slice %40 {offsets = [0, 96], sizes = [2, 32], strides = [1, 1]} : vector<2x128xf32> to vector<2x32xf32>
    %56 = arith.negf %55 : vector<2x32xf32>
    %57 = math.exp %56 : vector<2x32xf32>
    %cst_18 = arith.constant 1.000000e+00 : f32
    %58 = vector.broadcast %cst_18 : f32 to vector<2x32xf32>
    %59 = arith.addf %58, %57 : vector<2x32xf32>
    %60 = arith.divf %58, %59 : vector<2x32xf32>
    %61 = arith.mulf %52, %34 : vector<2x32xf32>
    %62 = arith.mulf %46, %54 : vector<2x32xf32>
    %63 = arith.addf %61, %62 : vector<2x32xf32>
    %64 = math.tanh %63 : vector<2x32xf32>
    %65 = arith.mulf %60, %64 : vector<2x32xf32>
    %c2 = arith.constant 2 : index
    %c0_19 = arith.constant 0 : index
    %66 = vector.load %arg7[%c2, %c0_19] : memref<12x32xf32, #tpu.memory_space<vmem>>, vector<2x32xf32>
    tpu.vector_store %arg7[%c2, %c0_19], %65 {strides = array<i32>} : memref<12x32xf32, #tpu.memory_space<vmem>>, vector<2x32xf32>,
    %67 = vector.extract_strided_slice %5 {offsets = [4, 0], sizes = [2, 128], strides = [1, 1]} : vector<12x128xf32> to vector<2x128xf32>
    %cst_20 = arith.constant dense<0.000000e+00> : vector<2x128xf32>
    %68 = tpu.matmul %65, %6, %cst_20 {dimension_numbers = #tpu.dot_dimension_numbers<[1], [0], [0], [1], [0, 0, 1, 1], [], []>} : vector<2x32xf32>, vector<32x128xf32>, vector<2x128xf32> -> vector<2x128xf32>
    %69 = arith.addf %67, %68 : vector<2x128xf32>
    %70 = vector.extract_strided_slice %69 {offsets = [0, 0], sizes = [2, 32], strides = [1, 1]} : vector<2x128xf32> to vector<2x32xf32>
    %71 = arith.negf %70 : vector<2x32xf32>
    %72 = math.exp %71 : vector<2x32xf32>
    %cst_21 = arith.constant 1.000000e+00 : f32
    %73 = vector.broadcast %cst_21 : f32 to vector<2x32xf32>
    %74 = arith.addf %73, %72 : vector<2x32xf32>
    %75 = arith.divf %73, %74 : vector<2x32xf32>
    %76 = vector.extract_strided_slice %69 {offsets = [0, 32], sizes = [2, 32], strides = [1, 1]} : vector<2x128xf32> to vector<2x32xf32>
    %77 = arith.negf %76 : vector<2x32xf32>
    %78 = math.exp %77 : vector<2x32xf32>
    %cst_22 = arith.constant 1.000000e+00 : f32
    %79 = vector.broadcast %cst_22 : f32 to vector<2x32xf32>
    %80 = arith.addf %79, %78 : vector<2x32xf32>
    %81 = arith.divf %79, %80 : vector<2x32xf32>
    %82 = vector.extract_strided_slice %69 {offsets = [0, 64], sizes = [2, 32], strides = [1, 1]} : vector<2x128xf32> to vector<2x32xf32>
    %83 = math.tanh %82 : vector<2x32xf32>
    %84 = vector.extract_strided_slice %69 {offsets = [0, 96], sizes = [2, 32], strides = [1, 1]} : vector<2x128xf32> to vector<2x32xf32>
    %85 = arith.negf %84 : vector<2x32xf32>
    %86 = math.exp %85 : vector<2x32xf32>
    %cst_23 = arith.constant 1.000000e+00 : f32
    %87 = vector.broadcast %cst_23 : f32 to vector<2x32xf32>
    %88 = arith.addf %87, %86 : vector<2x32xf32>
    %89 = arith.divf %87, %88 : vector<2x32xf32>
    %90 = arith.mulf %81, %63 : vector<2x32xf32>
    %91 = arith.mulf %75, %83 : vector<2x32xf32>
    %92 = arith.addf %90, %91 : vector<2x32xf32>
    %93 = math.tanh %92 : vector<2x32xf32>
    %94 = arith.mulf %89, %93 : vector<2x32xf32>
    %c4 = arith.constant 4 : index
    %c0_24 = arith.constant 0 : index
    %95 = vector.load %arg7[%c4, %c0_24] : memref<12x32xf32, #tpu.memory_space<vmem>>, vector<2x32xf32>
    tpu.vector_store %arg7[%c4, %c0_24], %94 {strides = array<i32>} : memref<12x32xf32, #tpu.memory_space<vmem>>, vector<2x32xf32>,
    %96 = vector.extract_strided_slice %5 {offsets = [6, 0], sizes = [2, 128], strides = [1, 1]} : vector<12x128xf32> to vector<2x128xf32>
    %cst_25 = arith.constant dense<0.000000e+00> : vector<2x128xf32>
    %97 = tpu.matmul %94, %6, %cst_25 {dimension_numbers = #tpu.dot_dimension_numbers<[1], [0], [0], [1], [0, 0, 1, 1], [], []>} : vector<2x32xf32>, vector<32x128xf32>, vector<2x128xf32> -> vector<2x128xf32>
    %98 = arith.addf %96, %97 : vector<2x128xf32>
    %99 = vector.extract_strided_slice %98 {offsets = [0, 0], sizes = [2, 32], strides = [1, 1]} : vector<2x128xf32> to vector<2x32xf32>
    %100 = arith.negf %99 : vector<2x32xf32>
    %101 = math.exp %100 : vector<2x32xf32>
    %cst_26 = arith.constant 1.000000e+00 : f32
    %102 = vector.broadcast %cst_26 : f32 to vector<2x32xf32>
    %103 = arith.addf %102, %101 : vector<2x32xf32>
    %104 = arith.divf %102, %103 : vector<2x32xf32>
    %105 = vector.extract_strided_slice %98 {offsets = [0, 32], sizes = [2, 32], strides = [1, 1]} : vector<2x128xf32> to vector<2x32xf32>
    %106 = arith.negf %105 : vector<2x32xf32>
    %107 = math.exp %106 : vector<2x32xf32>
    %cst_27 = arith.constant 1.000000e+00 : f32
    %108 = vector.broadcast %cst_27 : f32 to vector<2x32xf32>
    %109 = arith.addf %108, %107 : vector<2x32xf32>
    %110 = arith.divf %108, %109 : vector<2x32xf32>
    %111 = vector.extract_strided_slice %98 {offsets = [0, 64], sizes = [2, 32], strides = [1, 1]} : vector<2x128xf32> to vector<2x32xf32>
    %112 = math.tanh %111 : vector<2x32xf32>
    %113 = vector.extract_strided_slice %98 {offsets = [0, 96], sizes = [2, 32], strides = [1, 1]} : vector<2x128xf32> to vector<2x32xf32>
    %114 = arith.negf %113 : vector<2x32xf32>
    %115 = math.exp %114 : vector<2x32xf32>
    %cst_28 = arith.constant 1.000000e+00 : f32
    %116 = vector.broadcast %cst_28 : f32 to vector<2x32xf32>
    %117 = arith.addf %116, %115 : vector<2x32xf32>
    %118 = arith.divf %116, %117 : vector<2x32xf32>
    %119 = arith.mulf %110, %92 : vector<2x32xf32>
    %120 = arith.mulf %104, %112 : vector<2x32xf32>
    %121 = arith.addf %119, %120 : vector<2x32xf32>
    %122 = math.tanh %121 : vector<2x32xf32>
    %123 = arith.mulf %118, %122 : vector<2x32xf32>
    %c6 = arith.constant 6 : index
    %c0_29 = arith.constant 0 : index
    %124 = vector.load %arg7[%c6, %c0_29] : memref<12x32xf32, #tpu.memory_space<vmem>>, vector<2x32xf32>
    tpu.vector_store %arg7[%c6, %c0_29], %123 {strides = array<i32>} : memref<12x32xf32, #tpu.memory_space<vmem>>, vector<2x32xf32>,
    %125 = vector.extract_strided_slice %5 {offsets = [8, 0], sizes = [2, 128], strides = [1, 1]} : vector<12x128xf32> to vector<2x128xf32>
    %cst_30 = arith.constant dense<0.000000e+00> : vector<2x128xf32>
    %126 = tpu.matmul %123, %6, %cst_30 {dimension_numbers = #tpu.dot_dimension_numbers<[1], [0], [0], [1], [0, 0, 1, 1], [], []>} : vector<2x32xf32>, vector<32x128xf32>, vector<2x128xf32> -> vector<2x128xf32>
    %127 = arith.addf %125, %126 : vector<2x128xf32>
    %128 = vector.extract_strided_slice %127 {offsets = [0, 0], sizes = [2, 32], strides = [1, 1]} : vector<2x128xf32> to vector<2x32xf32>
    %129 = arith.negf %128 : vector<2x32xf32>
    %130 = math.exp %129 : vector<2x32xf32>
    %cst_31 = arith.constant 1.000000e+00 : f32
    %131 = vector.broadcast %cst_31 : f32 to vector<2x32xf32>
    %132 = arith.addf %131, %130 : vector<2x32xf32>
    %133 = arith.divf %131, %132 : vector<2x32xf32>
    %134 = vector.extract_strided_slice %127 {offsets = [0, 32], sizes = [2, 32], strides = [1, 1]} : vector<2x128xf32> to vector<2x32xf32>
    %135 = arith.negf %134 : vector<2x32xf32>
    %136 = math.exp %135 : vector<2x32xf32>
    %cst_32 = arith.constant 1.000000e+00 : f32
    %137 = vector.broadcast %cst_32 : f32 to vector<2x32xf32>
    %138 = arith.addf %137, %136 : vector<2x32xf32>
    %139 = arith.divf %137, %138 : vector<2x32xf32>
    %140 = vector.extract_strided_slice %127 {offsets = [0, 64], sizes = [2, 32], strides = [1, 1]} : vector<2x128xf32> to vector<2x32xf32>
    %141 = math.tanh %140 : vector<2x32xf32>
    %142 = vector.extract_strided_slice %127 {offsets = [0, 96], sizes = [2, 32], strides = [1, 1]} : vector<2x128xf32> to vector<2x32xf32>
    %143 = arith.negf %142 : vector<2x32xf32>
    %144 = math.exp %143 : vector<2x32xf32>
    %cst_33 = arith.constant 1.000000e+00 : f32
    %145 = vector.broadcast %cst_33 : f32 to vector<2x32xf32>
    %146 = arith.addf %145, %144 : vector<2x32xf32>
    %147 = arith.divf %145, %146 : vector<2x32xf32>
    %148 = arith.mulf %139, %121 : vector<2x32xf32>
    %149 = arith.mulf %133, %141 : vector<2x32xf32>
    %150 = arith.addf %148, %149 : vector<2x32xf32>
    %151 = math.tanh %150 : vector<2x32xf32>
    %152 = arith.mulf %147, %151 : vector<2x32xf32>
    %c8 = arith.constant 8 : index
    %c0_34 = arith.constant 0 : index
    %153 = vector.load %arg7[%c8, %c0_34] : memref<12x32xf32, #tpu.memory_space<vmem>>, vector<2x32xf32>
    tpu.vector_store %arg7[%c8, %c0_34], %152 {strides = array<i32>} : memref<12x32xf32, #tpu.memory_space<vmem>>, vector<2x32xf32>,
    %154 = vector.extract_strided_slice %5 {offsets = [10, 0], sizes = [2, 128], strides = [1, 1]} : vector<12x128xf32> to vector<2x128xf32>
    %cst_35 = arith.constant dense<0.000000e+00> : vector<2x128xf32>
    %155 = tpu.matmul %152, %6, %cst_35 {dimension_numbers = #tpu.dot_dimension_numbers<[1], [0], [0], [1], [0, 0, 1, 1], [], []>} : vector<2x32xf32>, vector<32x128xf32>, vector<2x128xf32> -> vector<2x128xf32>
    %156 = arith.addf %154, %155 : vector<2x128xf32>
    %157 = vector.extract_strided_slice %156 {offsets = [0, 0], sizes = [2, 32], strides = [1, 1]} : vector<2x128xf32> to vector<2x32xf32>
    %158 = arith.negf %157 : vector<2x32xf32>
    %159 = math.exp %158 : vector<2x32xf32>
    %cst_36 = arith.constant 1.000000e+00 : f32
    %160 = vector.broadcast %cst_36 : f32 to vector<2x32xf32>
    %161 = arith.addf %160, %159 : vector<2x32xf32>
    %162 = arith.divf %160, %161 : vector<2x32xf32>
    %163 = vector.extract_strided_slice %156 {offsets = [0, 32], sizes = [2, 32], strides = [1, 1]} : vector<2x128xf32> to vector<2x32xf32>
    %164 = arith.negf %163 : vector<2x32xf32>
    %165 = math.exp %164 : vector<2x32xf32>
    %cst_37 = arith.constant 1.000000e+00 : f32
    %166 = vector.broadcast %cst_37 : f32 to vector<2x32xf32>
    %167 = arith.addf %166, %165 : vector<2x32xf32>
    %168 = arith.divf %166, %167 : vector<2x32xf32>
    %169 = vector.extract_strided_slice %156 {offsets = [0, 64], sizes = [2, 32], strides = [1, 1]} : vector<2x128xf32> to vector<2x32xf32>
    %170 = math.tanh %169 : vector<2x32xf32>
    %171 = vector.extract_strided_slice %156 {offsets = [0, 96], sizes = [2, 32], strides = [1, 1]} : vector<2x128xf32> to vector<2x32xf32>
    %172 = arith.negf %171 : vector<2x32xf32>
    %173 = math.exp %172 : vector<2x32xf32>
    %cst_38 = arith.constant 1.000000e+00 : f32
    %174 = vector.broadcast %cst_38 : f32 to vector<2x32xf32>
    %175 = arith.addf %174, %173 : vector<2x32xf32>
    %176 = arith.divf %174, %175 : vector<2x32xf32>
    %177 = arith.mulf %168, %150 : vector<2x32xf32>
    %178 = arith.mulf %162, %170 : vector<2x32xf32>
    %179 = arith.addf %177, %178 : vector<2x32xf32>
    %180 = math.tanh %179 : vector<2x32xf32>
    %181 = arith.mulf %176, %180 : vector<2x32xf32>
    %c10 = arith.constant 10 : index
    %c0_39 = arith.constant 0 : index
    %182 = vector.load %arg7[%c10, %c0_39] : memref<12x32xf32, #tpu.memory_space<vmem>>, vector<2x32xf32>
    tpu.vector_store %arg7[%c10, %c0_39], %181 {strides = array<i32>} : memref<12x32xf32, #tpu.memory_space<vmem>>, vector<2x32xf32>,
    %c0_40 = arith.constant 0 : index
    %c0_41 = arith.constant 0 : index
    %183 = vector.load %arg7[%c0_40, %c0_41] : memref<12x32xf32, #tpu.memory_space<vmem>>, vector<12x32xf32>
    %c0_42 = arith.constant 0 : index
    %c0_43 = arith.constant 0 : index
    %184 = vector.load %arg4[%c0_42, %c0_43] : memref<32x128xf32, #tpu.memory_space<vmem>>, vector<32x128xf32>
    %cst_44 = arith.constant dense<0.000000e+00> : vector<12x128xf32>
    %185 = tpu.matmul %183, %184, %cst_44 {dimension_numbers = #tpu.dot_dimension_numbers<[1], [0], [0], [1], [0, 0, 1, 1], [], []>} : vector<12x32xf32>, vector<32x128xf32>, vector<12x128xf32> -> vector<12x128xf32>
    %c0_45 = arith.constant 0 : index
    %c0_46 = arith.constant 0 : index
    %186 = vector.load %arg5[%c0_45, %c0_46] : memref<1x128xf32, #tpu.memory_space<vmem>>, vector<1x128xf32>
    %187 = vector.broadcast %186 : vector<1x128xf32> to vector<12x128xf32>
    %188 = arith.addf %185, %187 : vector<12x128xf32>
    %c0_47 = arith.constant 0 : index
    %c0_48 = arith.constant 0 : index
    %189 = vector.load %arg6[%c0_47, %c0_48] : memref<12x128xf32, #tpu.memory_space<vmem>>, vector<12x128xf32>
    tpu.vector_store %arg6[%c0_47, %c0_48], %188 {strides = array<i32>} : memref<12x128xf32, #tpu.memory_space<vmem>>, vector<12x128xf32>,
    return
  }
}

</mosaic_0001>

<bundles_post_ra>
// kernel: tpu_custom_call.1
= control target key start
LH: loop header
LB: loop body
LE: loop exit
PB: predicated region body
PF: predicated region fallthrough
CT: control target
= control target key end

     0   :  { %11 = vsyncpa [#allocation4], 0  ;;  %s1982_s0 = inlined_call_operand.hbm [shape: f32[12,640], index: 0, kind: input, shape index: {}]   ;;  %s1983_s1 = inlined_call_operand.hbm [shape: f32[640,128], index: 1, kind: input, shape index: {}]   ;;  %s1984_s2 = inlined_call_operand.hbm [shape: f32[32,128], index: 2, kind: input, shape index: {}]   ;;  %s1985_s3 = inlined_call_operand.vmem [shape: f32[1,128], index: 3, kind: input, shape index: {}]   ;;  %s1986_s4 = inlined_call_operand.hbm [shape: f32[32,128], index: 4, kind: input, shape index: {}]   ;;  %s1987_s5 = inlined_call_operand.vmem [shape: f32[1,128], index: 5, kind: input, shape index: {}]   ;;  %s1988_s6 = inlined_call_operand.hbm [shape: f32[12,128], index: 6, kind: output, shape index: {}]  }
   0x1   :  { %12 = vsyncpa [#allocation7], 0 }
   0x2   :  { %13 = vsyncpa [#allocation10], 0 }
   0x3   :  { %14 = vsyncpa [#allocation5], 0  ;;  %s1751_s21 = smov [#allocation6]   ;;  %s1633_s25 = scalar_lea.hbm %s1983_s1, 10240 }
   0x4   :  { %s32_s22 = sshll.u32 %s1751_s21, 4  ;;  %p1634_p0 = scmp.ne.s32.totalorder %s1983_s1, %s1633_s25  ;;  %s33_s22 = int_to_ptr.vmem [resolvable:$true] %s32_s22 }
   0x5   :  { %p1637_p1 = scmp.lt.u32.totalorder %s1633_s25, %s1983_s1 }
   0x7   :  { %p1639_p2 = pnand %p1637_p1, %p1634_p0 }
   0x9   :  { %1642 = shalt.err (!%p1639_p2)
}
   0xa   :  { %s1643_s30 = scalar_lea.vmem %s33_s22, 10240  ;;  %p1648_p4 = scmp.lt.s32.totalorder %s33_s22, %s33_s22 }
   0xb   :  { %p1644_p3 = scmp.ne.s32.totalorder %s33_s22, %s1643_s30  ;;  %p1649_p5 = scmp.lt.s32.totalorder %s1643_s30, %s1643_s30 }
   0xd   :  { %p1650_p6 = por %p1649_p5, %p1648_p4 }
   0xf   :  { %p1651_p7 = pnand %p1650_p6, %p1644_p3 }
  0x11   :  { %1654 = shalt.err (!%p1651_p7)
}
  0x12   :  { %s1752_s7 = smov 128   ;;  %s1753_s8 = smov 8  }
  0x13   :  { %38 = dma.hbm_to_vmem [thread:$0]  %s1983_s1, 10240, %s33_s22, [#allocation7], %s1752_s7, %s1752_s7, %s1753_s8  }
  0x14   :  { %s1754_s11 = smov [#allocation3]   ;;  %s1655_s15 = scalar_lea.hbm %s1982_s0, 1280 }
  0x15   :  { %s20_s12 = sshll.u32 %s1754_s11, 4  ;;  %p1656_p8 = scmp.ne.s32.totalorder %s1982_s0, %s1655_s15  ;;  %s21_s12 = int_to_ptr.vmem [resolvable:$true] %s20_s12 }
  0x16   :  { %p1659_p9 = scmp.lt.u32.totalorder %s1655_s15, %s1982_s0 }
  0x18   :  { %p1661_p10 = pnand %p1659_p9, %p1656_p8 }
  0x1a   :  { %1664 = shalt.err (!%p1661_p10)
}
  0x1b   :  { %s1665_s20 = scalar_lea.vmem %s21_s12, 1280  ;;  %p1670_p12 = scmp.lt.s32.totalorder %s21_s12, %s21_s12 }
  0x1c   :  { %p1666_p11 = scmp.ne.s32.totalorder %s21_s12, %s1665_s20  ;;  %p1671_p13 = scmp.lt.s32.totalorder %s1665_s20, %s1665_s20 }
  0x1e   :  { %p1672_p0 = por %p1671_p13, %p1670_p12 }
  0x20   :  { %p1673_p1 = pnand %p1672_p0, %p1666_p11 }
  0x22   :  { %1676 = shalt.err (!%p1673_p1)
}
  0x23   :  { %s1755_s1 = smov 640   ;;  %s1756_s21 = smov 40  }
  0x24   :  { %26 = dma.hbm_to_vmem [thread:$0]  %s1982_s0, 1280, %s21_s12, [#allocation4], %s1755_s1, %s1755_s1, %s1756_s21  }
  0x25   :  { %s1757_s24 = smov [#allocation8]   ;;  %s1758_s26 = smov [#allocation9]  }
  0x26   :  { %s44_s25 = sshll.u32 %s1757_s24, 4  ;;  %s58_s27 = sshll.u32 %s1758_s26, 4  ;;  %s45_s25 = int_to_ptr.vmem [resolvable:$true] %s44_s25  ;;  %s1827_s27 = int_to_ptr.vmem [resolvable:$true] %s58_s27 }
  0x27   :  { %s1677_s30 = scalar_lea.hbm %s1984_s2, 512 }
  0x28   :  { %p1678_p2 = scmp.ne.s32.totalorder %s1984_s2, %s1677_s30  ;;  %p1681_p3 = scmp.lt.u32.totalorder %s1677_s30, %s1984_s2 }
  0x2a   :  { %p1683_p4 = pnand %p1681_p3, %p1678_p2 }
  0x2c   :  { %1686 = shalt.err (!%p1683_p4)
}
  0x2d   :  { %s1687_s0 = scalar_lea.vmem %s45_s25, 512  ;;  %p1692_p6 = scmp.lt.s32.totalorder %s45_s25, %s45_s25 }
  0x2e   :  { %p1688_p5 = scmp.ne.s32.totalorder %s45_s25, %s1687_s0  ;;  %p1693_p7 = scmp.lt.s32.totalorder %s1687_s0, %s1687_s0 }
  0x30   :  { %p1694_p8 = por %p1693_p7, %p1692_p6 }
  0x32   :  { %p1695_p9 = pnand %p1694_p8, %p1688_p5 }
  0x34   :  { %1698 = shalt.err (!%p1695_p9)
}
  0x35   :  { %50 = dma.hbm_to_vmem [thread:$0]  %s1984_s2, 512, %s45_s25, [#allocation7], %s1752_s7, %s1752_s7, %s1753_s8  }
  0x36   :  { %s1699_s17 = scalar_lea.hbm %s1986_s4, 512 }
  0x37   :  { %p1700_p10 = scmp.ne.s32.totalorder %s1986_s4, %s1699_s17  ;;  %p1703_p11 = scmp.lt.u32.totalorder %s1699_s17, %s1986_s4 }
  0x39   :  { %p1705_p12 = pnand %p1703_p11, %p1700_p10 }
  0x3b   :  { %1708 = shalt.err (!%p1705_p12)
}
  0x3c   :  { %s1709_s21 = scalar_lea.vmem %s1827_s27, 512  ;;  %p1714_p0 = scmp.lt.s32.totalorder %s1827_s27, %s1827_s27 }
  0x3d   :  { %p1710_p13 = scmp.ne.s32.totalorder %s1827_s27, %s1709_s21  ;;  %p1715_p1 = scmp.lt.s32.totalorder %s1709_s21, %s1709_s21 }
  0x3f   :  { %p1716_p2 = por %p1715_p1, %p1714_p0 }
  0x41   :  { %p1717_p3 = pnand %p1716_p2, %p1710_p13 }
  0x43   :  { %1720 = shalt.err (!%p1717_p3)
}
  0x44   :  { %64 = dma.hbm_to_vmem [thread:$0]  %s1986_s4, 512, %s1827_s27, [#allocation10], %s1752_s7, %s1752_s7, %s1753_s8  }
  0x45   :  { %1743 = dma.done.wait [#allocation4], 1280  }
  0x46   :  { %1744 = vsyncadd [#allocation4], 4294966016 }
  0x47   :  { %1745 = dma.done.wait [#allocation7], 10752  }
  0x48   :  { %1746 = vsyncadd [#allocation7], 4294956544 }
  0x49   :  { %1747 = dma.done.wait [#allocation10], 512  }
  0x4a   :  { %1748 = vsyncadd [#allocation10], 4294966784  ;;  %v105_v0 = vld [vmem:[#allocation6 + $0x80] sm:$0xff]  ;;  %v106_v1 = vld [vmem:[#allocation6 + $0x88] sm:$0xff]  ;;  %vm1760_vm0 = vmmov 0   ;;  %s1763_s24 = smov 32  }
  0x4b   :  { %v89_v2 = vld [vmem:[#allocation6] sm:$0xff]  ;;  %v1431_v3 = vpack.c.bf16 %v106_v1, %v105_v0  ;;  %v90_v4 = vld [vmem:[#allocation6 + $0x8] sm:$0xff]  ;;  %v107_v11 = vld [vmem:[#allocation6 + $0x90] sm:$0xff]  ;;  %vm508_vm1 = vcmask 254976   ;;  %vm405_vm2 = vcmask 261120   ;;  %vm617_vm3 = vcmask 257026  }
  0x4c   :  { %v137_v5 = vld [vmem:[#allocation6 + $0x180] sm:$0xff]  ;;  %v138_v6 = vld [vmem:[#allocation6 + $0x188] sm:$0xff]  ;;  %v1433_v7 = vpack.c.bf16 %v90_v4, %v89_v2  ;;  %v108_v13 = vld [vmem:[#allocation6 + $0x98] sm:$0xff]  ;;  %vm841_vm4 = vcmask 261126   ;;  %vm729_vm5 = vcmask 259076   ;;  %s1764_s27 = smov [#allocation11]  }
  0x4d   :  { %v1463_v8 = vpack.c.bf16 %v138_v6, %v137_v5  ;;  %v121_v9 = vld [vmem:[#allocation6 + $0x100] sm:$0xff]  ;;  %v122_v10 = vld [vmem:[#allocation6 + $0x108] sm:$0xff]  ;;  %1432 = vmatprep.subr.bf16.mxu0 %v1431_v3  ;;  %v91_v14 = vld [vmem:[#allocation6 + $0x10] sm:$0xff]  ;;  %v1435_v16 = vpack.c.bf16 %v108_v13, %v107_v11  ;;  %s1160_s28 = sshll.u32 %s1764_s27, 4  ;;  %s1161_s28 = int_to_ptr.vmem [resolvable:$true] %s1160_s28 }
  0x4e   :  { %v1465_v12 = vpack.c.bf16 %v122_v10, %v121_v9  ;;  %v92_v15 = vld [vmem:[#allocation6 + $0x18] sm:$0xff]  ;;  %1434 = vmatpush3.bf16.msra.mxu0 %v1433_v7  ;;  %v139_v18 = vld [vmem:[#allocation6 + $0x190] sm:$0xff]  ;;  %v109_v23 = vld [vmem:[#allocation6 + $0xa0] sm:$0xff]  ;;  %s1721_s29 = scalar_lea.vmem %s1161_s28, 256  ;;  %p1726_p5 = scmp.lt.s32.totalorder %s1161_s28, %s1161_s28 }
  0x4f   :  { %1464 = vmatprep.subr.bf16.mxu1 %v1463_v8  ;;  %v1437_v17 = vpack.c.bf16 %v92_v15, %v91_v14  ;;  %v140_v19 = vld [vmem:[#allocation6 + $0x198] sm:$0xff]  ;;  %v123_v20 = vld [vmem:[#allocation6 + $0x110] sm:$0xff]  ;;  %v110_v24 = vld [vmem:[#allocation6 + $0xa8] sm:$0xff]  ;;  %1436 = vmatprep.subr.bf16.mxu0 %v1435_v16  ;;  %p1722_p4 = scmp.ne.s32.totalorder %s1161_s28, %s1721_s29  ;;  %p1727_p6 = scmp.lt.s32.totalorder %s1721_s29, %s1721_s29 }
  0x50   :  { %1466 = vmatpush3.bf16.msra.mxu1 %v1465_v12  ;;  %v1467_v21 = vpack.c.bf16 %v140_v19, %v139_v18  ;;  %v124_v22 = vld [vmem:[#allocation6 + $0x118] sm:$0xff]  ;;  %v1439_v26 = vpack.c.bf16 %v110_v24, %v109_v23  ;;  %v93_v27 = vld [vmem:[#allocation6 + $0x20] sm:$0xff]  ;;  %v94_v28 = vld [vmem:[#allocation6 + $0x28] sm:$0xff] }
  0x51   :  { %v1469_v25 = vpack.c.bf16 %v124_v22, %v123_v20  ;;  %v141_v29 = vld [vmem:[#allocation6 + $0x1a0] sm:$0xff]  ;;  %v142_v30 = vld [vmem:[#allocation6 + $0x1a8] sm:$0xff]  ;;  %v1441_v33 = vpack.c.bf16 %v94_v28, %v93_v27  ;;  %v111_v35 = vld [vmem:[#allocation6 + $0xb0] sm:$0xff]  ;;  %p1728_p7 = por %p1727_p6, %p1726_p5 }
  0x52   :  { %1468 = vmatprep.subr.bf16.mxu1 %v1467_v21  ;;  %v125_v31 = vld [vmem:[#allocation6 + $0x120] sm:$0xff]  ;;  %v126_v32 = vld [vmem:[#allocation6 + $0x128] sm:$0xff]  ;;  %1438 = vmatpush3.bf16.msra.mxu0 %v1437_v17  ;;  %v1471_v34 = vpack.c.bf16 %v142_v30, %v141_v29  ;;  %v112_v36 = vld [vmem:[#allocation6 + $0xb8] sm:$0xff] }
  0x53   :  { %v95_v37 = vld [vmem:[#allocation6 + $0x30] sm:$0xff]  ;;  %1440 = vmatprep.subr.bf16.mxu0 %v1439_v26  ;;  %v1473_v38 = vpack.c.bf16 %v126_v32, %v125_v31  ;;  %v1443_v39 = vpack.c.bf16 %v112_v36, %v111_v35  ;;  %v96_v40 = vld [vmem:[#allocation6 + $0x38] sm:$0xff]  ;;  %v113_v46 = vld [vmem:[#allocation6 + $0xc0] sm:$0xff]  ;;  %p1729_p8 = pnand %p1728_p7, %p1722_p4 }
  0x54   :  { %1470 = vmatpush3.bf16.msra.mxu1 %v1469_v25  ;;  %v143_v41 = vld [vmem:[#allocation6 + $0x1b0] sm:$0xff]  ;;  %v144_v42 = vld [vmem:[#allocation6 + $0x1b8] sm:$0xff]  ;;  %v114_v47 = vld [vmem:[#allocation6 + $0xc8] sm:$0xff]  ;;  %v1445_v48 = vpack.c.bf16 %v96_v40, %v95_v37 }
  0x55   :  { %1472 = vmatprep.subr.bf16.mxu1 %v1471_v34  ;;  %v1475_v43 = vpack.c.bf16 %v144_v42, %v143_v41  ;;  %v127_v44 = vld [vmem:[#allocation6 + $0x130] sm:$0xff]  ;;  %v128_v45 = vld [vmem:[#allocation6 + $0x138] sm:$0xff]  ;;  %v145_v49 = vld [vmem:[#allocation6 + $0x1c0] sm:$0xff]  ;;  %v1447_v52 = vpack.c.bf16 %v114_v47, %v113_v46  ;;  %v1759_v47 = vmov 0.0|0.0  }
  0x56   :  { %1442 = vmatpush3.bf16.msra.mxu0 %v1441_v33  ;;  %v146_v50 = vld [vmem:[#allocation6 + $0x1c8] sm:$0xff]  ;;  %v1477_v51 = vpack.c.bf16 %v128_v45, %v127_v44  ;;  %v97_v53 = vld [vmem:[#allocation6 + $0x40] sm:$0xff]  ;;  %v115_v58 = vld [vmem:[#allocation6 + $0xd0] sm:$0xff] }
  0x57   :  { %1444 = vmatprep.subr.bf16.mxu0 %v1443_v39  ;;  %v98_v54 = vld [vmem:[#allocation6 + $0x48] sm:$0xff]  ;;  %v129_v55 = vld [vmem:[#allocation6 + $0x140] sm:$0xff]  ;;  %v1479_v56 = vpack.c.bf16 %v146_v50, %v145_v49  ;;  %v116_v59 = vld [vmem:[#allocation6 + $0xd8] sm:$0xff] }
  0x58   :  { %1474 = vmatpush3.bf16.msra.mxu1 %v1473_v38  ;;  %v130_v57 = vld [vmem:[#allocation6 + $0x148] sm:$0xff]  ;;  %v147_v60 = vld [vmem:[#allocation6 + $0x1d0] sm:$0xff]  ;;  %v148_v61 = vld [vmem:[#allocation6 + $0x1d8] sm:$0xff]  ;;  %v1449_v62 = vpack.c.bf16 %v98_v54, %v97_v53  ;;  %v1451_v0 = vpack.c.bf16 %v116_v59, %v115_v58 }
  0x59   :  { %1476 = vmatprep.subr.bf16.mxu1 %v1475_v43  ;;  %v1481_v63 = vpack.c.bf16 %v130_v57, %v129_v55  ;;  %v99_v1 = vld [vmem:[#allocation6 + $0x50] sm:$0xff]  ;;  %v100_v2 = vld [vmem:[#allocation6 + $0x58] sm:$0xff]  ;;  %v1483_v4 = vpack.c.bf16 %v148_v61, %v147_v60  ;;  %v117_v6 = vld [vmem:[#allocation6 + $0xe0] sm:$0xff] }
  0x5a   :  { %1446 = vmatpush3.bf16.msra.mxu0 %v1445_v48  ;;  %v131_v3 = vld [vmem:[#allocation6 + $0x150] sm:$0xff]  ;;  %v132_v5 = vld [vmem:[#allocation6 + $0x158] sm:$0xff]  ;;  %v118_v7 = vld [vmem:[#allocation6 + $0xe8] sm:$0xff]  ;;  %v1453_v10 = vpack.c.bf16 %v100_v2, %v99_v1 }
  0x5b   :  { %1448 = vmatprep.subr.bf16.mxu0 %v1447_v52  ;;  %v149_v8 = vld [vmem:[#allocation6 + $0x1e0] sm:$0xff]  ;;  %v150_v9 = vld [vmem:[#allocation6 + $0x1e8] sm:$0xff]  ;;  %v80_v12 = vld [vmem:[#allocation3 + $0x8] sm:$0xff]  ;;  %v1485_v13 = vpack.c.bf16 %v132_v5, %v131_v3  ;;  %v1455_v14 = vpack.c.bf16 %v118_v7, %v117_v6 }
  0x5c   :  { %1478 = vmatpush3.bf16.msra.mxu1 %v1477_v51  ;;  %v101_v11 = vld [vmem:[#allocation6 + $0x60] sm:$0xff]  ;;  %v102_v15 = vld [vmem:[#allocation6 + $0x68] sm:$0xff]  ;;  %v1487_v18 = vpack.c.bf16 %v150_v9, %v149_v8  ;;  %v119_v19 = vld [vmem:[#allocation6 + $0xf0] sm:$0xff]  ;;  %240 = vmatprep.mubr.f32.mxu0 %v80_v12 }
  0x5d   :  { %1480 = vmatprep.subr.bf16.mxu1 %v1479_v56  ;;  %v133_v16 = vld [vmem:[#allocation6 + $0x160] sm:$0xff]  ;;  %v134_v17 = vld [vmem:[#allocation6 + $0x168] sm:$0xff]  ;;  %v120_v20 = vld [vmem:[#allocation6 + $0xf8] sm:$0xff]  ;;  %v1457_v24 = vpack.c.bf16 %v102_v15, %v101_v11 }
  0x5e   :  { %1450 = vmatpush3.bf16.msra.mxu0 %v1449_v62  ;;  %v82_v21 = vld [vmem:[#allocation3 + $0x18] sm:$0xff]  ;;  %v151_v22 = vld [vmem:[#allocation6 + $0x1f0] sm:$0xff]  ;;  %v152_v23 = vld [vmem:[#allocation6 + $0x1f8] sm:$0xff]  ;;  %v1489_v25 = vpack.c.bf16 %v134_v17, %v133_v16  ;;  %v1459_v26 = vpack.c.bf16 %v120_v20, %v119_v19  ;;  %v1761_v62 = vmov 0.0  }
  0x5f   :  { %1452 = vmatprep.subr.bf16.mxu0 %v1451_v0  ;;  %315 = vmatprep.mubr.f32.mxu1 %v82_v21  ;;  %v103_v27 = vld [vmem:[#allocation6 + $0x70] sm:$0xff]  ;;  %v104_v28 = vld [vmem:[#allocation6 + $0x78] sm:$0xff]  ;;  %v1491_v30 = vpack.c.bf16 %v152_v23, %v151_v22  ;;  %v153_v32 = vld [vmem:[#allocation6 + $0x200] sm:$0xff] }
  0x60   :  { %1482 = vmatpush3.bf16.msra.mxu1 %v1481_v63  ;;  %v135_v29 = vld [vmem:[#allocation6 + $0x170] sm:$0xff]  ;;  %v136_v31 = vld [vmem:[#allocation6 + $0x178] sm:$0xff]  ;;  %v154_v33 = vld [vmem:[#allocation6 + $0x208] sm:$0xff]  ;;  %v1461_v34 = vpack.c.bf16 %v104_v28, %v103_v27 }
  0x61   :  { %1484 = vmatprep.subr.bf16.mxu1 %v1483_v4  ;;  %v1493_v35 = vpack.c.bf16 %v136_v31, %v135_v29  ;;  %v1495_v36 = vpack.c.bf16 %v154_v33, %v153_v32  ;;  %v155_v37 = vld [vmem:[#allocation6 + $0x210] sm:$0xff]  ;;  %v156_v38 = vld [vmem:[#allocation6 + $0x218] sm:$0xff]  ;;  %v401_v39 = vld [vmem:[#allocation8] sm:$0xff] }
  0x62   :  { %1454 = vmatpush3.bf16.msra.mxu0 %v1453_v10  ;;  %v402_v40 = vld [vmem:[#allocation8 + $0x8] sm:$0xff]  ;;  %v79_v41 = vld [vmem:[#allocation3] sm:$0xff]  ;;  %v81_v42 = vld [vmem:[#allocation3 + $0x10] sm:$0xff]  ;;  %v1499_v43 = vpack.c.bf16 %v156_v38, %v155_v37 }
  0x63   :  { %1456 = vmatprep.subr.bf16.mxu0 %v1455_v14  ;;  %v157_v44 = vld [vmem:[#allocation6 + $0x220] sm:$0xff]  ;;  %v158_v45 = vld [vmem:[#allocation6 + $0x228] sm:$0xff]  ;;  %v1865_v48 = vpack.c.bf16 %v402_v40, %v401_v39  ;;  %v87_v49 = vld [vmem:[#allocation3 + $0x40] sm:$0xf] }
  0x64   :  { %1486 = vmatpush3.bf16.msra.mxu1 %v1485_v13  ;;  %v85_v46 = vld [vmem:[#allocation3 + $0x30] sm:$0xf]  ;;  %v403_v50 = vld [vmem:[#allocation8 + $0x10] sm:$0xff]  ;;  %v404_v51 = vld [vmem:[#allocation8 + $0x18] sm:$0xff]  ;;  %v1503_v53 = vpack.c.bf16 %v158_v45, %v157_v44 }
  0x65   :  { %1488 = vmatprep.subr.bf16.mxu1 %v1487_v18  ;;  %v84_v52 = vld [vmem:[#allocation3 + $0x28] sm:$0xf]  ;;  %v86_v54 = vld [vmem:[#allocation3 + $0x38] sm:$0xf]  ;;  %v159_v55 = vld [vmem:[#allocation6 + $0x230] sm:$0xff]  ;;  %v1868_v58 = vpack.c.bf16 %v404_v51, %v403_v50 }
  0x66   :  { %1458 = vmatpush3.bf16.msra.mxu0 %v1457_v24  ;;  %v160_v56 = vld [vmem:[#allocation6 + $0x238] sm:$0xff]  ;;  %v83_v57 = vld [vmem:[#allocation3 + $0x20] sm:$0xff]  ;;  %v161_v60 = vld [vmem:[#allocation6 + $0x240] sm:$0xff] }
  0x67   :  { %1460 = vmatprep.subr.bf16.mxu0 %v1459_v26  ;;  %v1507_v59 = vpack.c.bf16 %v160_v56, %v159_v55  ;;  %v162_v61 = vld [vmem:[#allocation6 + $0x248] sm:$0xff]  ;;  %v163_v0 = vld [vmem:[#allocation6 + $0x250] sm:$0xff]  ;;  %v164_v1 = vld [vmem:[#allocation6 + $0x258] sm:$0xff] }
  0x68   :  { %1490 = vmatpush3.bf16.msra.mxu1 %v1489_v25  ;;  %v1511_v63 = vpack.c.bf16 %v162_v61, %v161_v60  ;;  %v1515_v2 = vpack.c.bf16 %v164_v1, %v163_v0  ;;  %v165_v3 = vld [vmem:[#allocation6 + $0x260] sm:$0xff]  ;;  %v166_v4 = vld [vmem:[#allocation6 + $0x268] sm:$0xff]  ;;  %v167_v6 = vld [vmem:[#allocation6 + $0x270] sm:$0xff] }
  0x69   :  { %1492 = vmatprep.subr.bf16.mxu1 %v1491_v30  ;;  %v1519_v5 = vpack.c.bf16 %v166_v4, %v165_v3  ;;  %v168_v7 = vld [vmem:[#allocation6 + $0x278] sm:$0xff]  ;;  %v1174_v11 = vld [vmem:[%s1985_s3] ss:$0 sm:$0xff]  ;;  %s1762_s3 = smov 64  }
  0x6a   :  { %1462 = vmatpush3.bf16.msra.mxu0 %v1461_v34  ;;  %v1523_v8 = vpack.c.bf16 %v168_v7, %v167_v6  ;;  %v88_v9 = vld [vmem:[#allocation3 + $0x48] sm:$0xf] }
  0x6b   :  { %1496 = vmatprep.subr.bf16.mxu0 %v1495_v36 }
  0x6c   :  { %1494 = vmatpush3.bf16.msra.mxu1 %v1493_v35 }
  0x6d   :  { %1527 = vmatprep.subr.bf16.mxu1 %v1759_v47  ;;  %241 = vmatmul.mubr.f32.vlgmr.msra.gmra.mrb[0].mxu0 %v79_v41 }
  0x6e   :  { %1498 = vmatpush3.bf16.msra.mxu0 %v1495_v36  ;;  %245 = vmatprep.mubr.f32.mxu0 %v85_v46 }
  0x6f   :  { %316 = vmatmul.mubr.f32.vlgmr.msra.gmra.mrb[0].mxu1 %v81_v42  ;;  %1500 = vmatprep.subr.bf16.mxu0 %v1499_v43 }
  0x70   :  { %320 = vmatprep.mubr.f32.mxu1 %v87_v49  ;;  %1529 = vmatpush3.bf16.msra.mxu1 %v1865_v48 }
  0x71   :  { %246 = vmatmul.mubr.f32.gmra.mrb[2].mxu0 %v84_v52  ;;  %1530 = vmatprep.subr.bf16.mxu1 %v1759_v47 }
  0x72   :  { %1502 = vmatpush3.bf16.msra.mxu0 %v1499_v43  ;;  %1351 = vmatprep.mubr.f32.mxu0 %v83_v57 }
  0x73   :  { %321 = vmatmul.mubr.f32.gmra.mrb[2].mxu1 %v86_v54  ;;  %1504 = vmatprep.subr.bf16.mxu0 %v1503_v53 }
  0x74   :  { %1532 = vmatpush3.bf16.msra.mxu1 %v1868_v58  ;;  %1362 = vmatprep.mubr.msk.f32.mxu1 %vm1760_vm0, %v1761_v62 }
  0x75   :  { %1533 = vmatprep.subr.bf16.mxu1 %v1759_v47 }
  0x76   :  { %1506 = vmatpush3.bf16.msra.mxu0 %v1503_v53 }
  0x77   :  { %1508 = vmatprep.subr.bf16.mxu0 %v1507_v59  ;;  %1363 = vmatmul.mubr.f32.vlgmr.msra.gmra.mrb[4].mxu1 %v1761_v62 }
  0x78   :  { %1535 = vmatpush3.bf16.msra.mxu1 %v1865_v48  ;;  %1373 = vmatprep.mubr.msk.f32.mxu1 %vm1760_vm0, %v1761_v62 }
  0x79   :  { %1536 = vmatprep.subr.bf16.mxu1 %v1759_v47 }
  0x7a   :  { %1510 = vmatpush3.bf16.msra.mxu0 %v1507_v59 }
  0x7b   :  { %1512 = vmatprep.subr.bf16.mxu0 %v1511_v63 }
  0x7c   :  { %1538 = vmatpush3.bf16.msra.mxu1 %v1868_v58 }
  0x7d   :  { %1539 = vmatprep.subr.bf16.mxu1 %v1759_v47 }
  0x7e   :  { %1514 = vmatpush3.bf16.msra.mxu0 %v1511_v63 }
  0x7f   :  { %1516 = vmatprep.subr.bf16.mxu0 %v1515_v2 }
  0x82   :  { %1518 = vmatpush3.bf16.msra.mxu0 %v1515_v2 }
  0x83   :  { %1520 = vmatprep.subr.bf16.mxu0 %v1519_v5 }
  0x86   :  { %1522 = vmatpush3.bf16.msra.mxu0 %v1519_v5 }
  0x87   :  { %1524 = vmatprep.subr.bf16.mxu0 %v1523_v8 }
  0x8a   :  { %1526 = vmatpush3.bf16.msra.mxu0 %v1523_v8 }
  0x8b   :  { %1551 = vmatprep.subr.bf16.mxu0 %v1759_v47 }
  0x8d   :  { %1352 = vmatmul.mubr.f32.vlgmr.msra.gmra.mrb[4].mxu0 %v88_v9 }
  0x8e   :  { %1553 = vmatpush3.bf16.msra.mxu0 %v1865_v48  ;;  %1406 = vmatprep.mubr.msk.f32.mxu0 %vm1760_vm0, %v1761_v62 }
  0x8f   :  { %1554 = vmatprep.subr.bf16.mxu0 %v1759_v47 }
  0x92   :  { %1556 = vmatpush3.bf16.msra.mxu0 %v1868_v58 }
 0x140   :  { %v1221_v10 = vpop.f32.mrb[0].mxu0 }
 0x141   :  { %v1222_v12 = vpop.f32.mrb[1].mxu0 }
 0x142   :  { %v1259_v13 = vpop.f32.mrb[0].mxu1  ;;  %v1223_v14 = vadd.f32 %v1222_v12, %v1221_v10 }
 0x143   :  { %v1260_v15 = vpop.f32.mrb[1].mxu1 }
 0x144   :  { %v1261_v16 = vadd.f32 %v1260_v15, %v1259_v13  ;;  %v243_v17 = vadd.f32 %v1223_v14, %v1174_v11  ;;  %v1224_v18 = vpop.f32.mrb[2].mxu0 }
 0x145   :  { %v1225_v19 = vpop.f32.mrb[3].mxu0 }
 0x146   :  { %v1262_v20 = vpop.f32.mrb[2].mxu1  ;;  %v1226_v21 = vadd.f32 %v1225_v19, %v1224_v18  ;;  %v318_v23 = vadd.f32 %v1261_v16, %v243_v17 }
 0x147   :  { %v1263_v22 = vpop.f32.mrb[3].mxu1 }
 0x148   :  { %v1264_v24 = vadd.f32 %v1263_v22, %v1262_v20  ;;  %v248_v25 = vadd.f32 %v1226_v21, %v1174_v11 }
 0x14a   :  { %v323_v26 = vadd.f32 %v1264_v24, %v248_v25  ;;  %v475_v27 = vpop.f32.mrb[4].mxu1 }
 0x14b   :  { %v1364_v28 = vpop.f32.mrb[5].mxu1 }
 0x160   :  { %v1353_v29 = vpop.f32.mrb[4].mxu0 }
 0x161   :  { %v1891_v30 = vadd.f32 %v1353_v29, %v323_v26  ;;  %v392_v31 = vpop.f32.mrb[5].mxu0 }
 0x162   :  { %v1893_v32 = vadd.f32 %v392_v31, %v318_v23 }
 0x164   :  { %v479_v33 = vadd.f32 %v475_v27, %v1893_v32 }
 0x166   :  { %1585 = vtanh.f32 %v479_v33  ;;  %v1175_v35 = vmul.f32 -1.442695, %v479_v33 }
 0x168   :  { %1587 = vpow2.f32 %v1175_v35 }
 0x170   :  { %v1586_v34 = vpop.eup %1585 }
 0x171   :  { %489 = vrot.lane.b32.xlu0 %v1586_v34, %s1762_s3 }
 0x172   :  { %v1588_v36 = vpop.eup %1587 }
 0x173   :  { %v483_v37 = vadd.f32 1.0, %v1588_v36 }
 0x175   :  { %1589 = vrcp.f32 %v483_v37 }
 0x17f   :  { %v1590_v38 = vpop.eup %1589 }
 0x180   :  { %v487_v41 = vmul.f32 0.0, %v1590_v38 }
 0x1e3   :  { %v490_v39 = vpop.permute.xlu0 %489 }
 0x1e4   :  { %v492_v40 = vmul.f32 %v1590_v38, %v490_v39 }
 0x1e6   :  { %494 = vrot.lane.b32.xlu0 %v492_v40, %s1763_s24 }
 0x258   :  { %v495_v42 = vpop.permute.xlu0 %494 }
 0x259   :  { %v497_v43 = vadd.f32 %v495_v42, %v487_v41 }
 0x25b   :  { %1591 = vtanh.f32 %v497_v43  ;;  %v594_v63 = vrot.slane %v497_v43, 6 }
 0x265   :  { %v1592_v44 = vpop.eup %1591 }
 0x266   :  { %500 = vrot.lane.b32.xlu1 %v1592_v44, %s1762_s3 }
 0x2d8   :  { %v501_v45 = vpop.permute.xlu1 %500 }
 0x2d9   :  { %v503_v46 = vmul.f32 %v1590_v38, %v501_v45 }
 0x2db   :  { %505 = vrot.lane.b32.xlu1 %v503_v46, %s1763_s24 }
 0x34d   :  { %v506_v49 = vpop.permute.xlu1 %505 }
 0x34e   :  { %509 = vst.msk [vmem:[#allocation2] sm:$0x3] %vm508_vm1, %v506_v49  ;;  %1374 = vmatmul.mubr.msk.f32.vlgmr.msra.gmra.mrb[6].mxu1 %vm405_vm2, %v506_v49 }
 0x34f   :  { %1541 = vmatpush3.bf16.msra.mxu1 %v1865_v48  ;;  %1384 = vmatprep.mubr.msk.f32.mxu1 %vm1760_vm0, %v1761_v62 }
 0x350   :  { %1542 = vmatprep.subr.bf16.mxu1 %v1759_v47 }
 0x353   :  { %1544 = vmatpush3.bf16.msra.mxu1 %v1868_v58 }
 0x354   :  { %1545 = vmatprep.subr.bf16.mxu1 %v1759_v47 }
 0x421   :  { %v578_v50 = vpop.f32.mrb[6].mxu1 }
 0x422   :  { %v583_v51 = vrot.slane %v578_v50, 6  ;;  %v1375_v52 = vpop.f32.mrb[7].mxu1 }
 0x424   :  { %v585_v53 = vadd.f32 %v583_v51, %v1893_v32 }
 0x426   :  { %1593 = vtanh.f32 %v585_v53  ;;  %v1177_v55 = vmul.f32 -1.442695, %v585_v53 }
 0x428   :  { %1595 = vpow2.f32 %v1177_v55 }
 0x430   :  { %v1594_v54 = vpop.eup %1593 }
 0x431   :  { %598 = vrot.lane.b32.xlu0 %v1594_v54, %s1762_s3 }
 0x432   :  { %v1596_v56 = vpop.eup %1595 }
 0x433   :  { %v589_v57 = vadd.f32 1.0, %v1596_v56 }
 0x435   :  { %1597 = vrcp.f32 %v589_v57 }
 0x43f   :  { %v1598_v59 = vpop.eup %1597 }
 0x440   :  { %v596_v0 = vmul.f32 %v1598_v59, %v594_v63 }
 0x4a3   :  { %v599_v60 = vpop.permute.xlu0 %598 }
 0x4a4   :  { %v601_v61 = vmul.f32 %v1598_v59, %v599_v60 }
 0x4a6   :  { %603 = vrot.lane.b32.xlu1 %v601_v61, %s1763_s24 }
 0x518   :  { %v604_v1 = vpop.permute.xlu1 %603 }
 0x519   :  { %v606_v2 = vadd.f32 %v604_v1, %v596_v0 }
 0x51b   :  { %1599 = vtanh.f32 %v606_v2  ;;  %v706_v19 = vrot.slane %v606_v2, 6 }
 0x525   :  { %v1600_v3 = vpop.eup %1599 }
 0x526   :  { %609 = vrot.lane.b32.xlu0 %v1600_v3, %s1762_s3 }
 0x598   :  { %v610_v4 = vpop.permute.xlu0 %609 }
 0x599   :  { %v1912_v5 = vmul.f32 %v1598_v59, %v610_v4 }
 0x59b   :  { %v619_v6 = vrot.slane %v1912_v5, 2 }
 0x59d   :  { %620 = vrot.lane.b32.xlu1 %v619_v6, %s1763_s24 }
 0x60f   :  { %v621_v7 = vpop.permute.xlu1 %620 }
 0x610   :  { %1385 = vmatmul.mubr.msk.f32.vlgmr.msra.gmra.mrb[8].mxu1 %vm405_vm2, %v621_v7 }
 0x611   :  { %1547 = vmatpush3.bf16.msra.mxu1 %v1865_v48  ;;  %1395 = vmatprep.mubr.msk.f32.mxu1 %vm1760_vm0, %v1761_v62 }
 0x612   :  { %1548 = vmatprep.subr.bf16.mxu1 %v1759_v47 }
 0x615   :  { %1550 = vmatpush3.bf16.msra.mxu1 %v1868_v58 }
 0x616   :  { %1557 = vmatprep.subr.bf16.mxu1 %v1759_v47 }
 0x6e3   :  { %v690_v8 = vpop.f32.mrb[8].mxu1 }
 0x6e4   :  { %v695_v9 = vrot.slane %v690_v8, 4  ;;  %v1386_v10 = vpop.f32.mrb[9].mxu1 }
 0x6e6   :  { %v697_v11 = vadd.f32 %v695_v9, %v1893_v32 }
 0x6e8   :  { %1601 = vtanh.f32 %v697_v11  ;;  %v1179_v13 = vmul.f32 -1.442695, %v697_v11 }
 0x6ea   :  { %1603 = vpow2.f32 %v1179_v13 }
 0x6f2   :  { %v1602_v12 = vpop.eup %1601 }
 0x6f3   :  { %710 = vrot.lane.b32.xlu0 %v1602_v12, %s1762_s3 }
 0x6f4   :  { %v1604_v14 = vpop.eup %1603 }
 0x6f5   :  { %v701_v15 = vadd.f32 1.0, %v1604_v14 }
 0x6f7   :  { %1605 = vrcp.f32 %v701_v15 }
 0x701   :  { %v1606_v16 = vpop.eup %1605 }
 0x702   :  { %v708_v20 = vmul.f32 %v1606_v16, %v706_v19 }
 0x765   :  { %v711_v17 = vpop.permute.xlu0 %710 }
 0x766   :  { %v713_v18 = vmul.f32 %v1606_v16, %v711_v17 }
 0x768   :  { %715 = vrot.lane.b32.xlu1 %v713_v18, %s1763_s24 }
 0x7da   :  { %v716_v21 = vpop.permute.xlu1 %715 }
 0x7db   :  { %v718_v22 = vadd.f32 %v716_v21, %v708_v20  ;;  %v1062_v21 = vld [vmem:[#allocation9 + $0x8] sm:$0xff] }
 0x7dd   :  { %1607 = vtanh.f32 %v718_v22 }
 0x7e7   :  { %v1608_v23 = vpop.eup %1607 }
 0x7e8   :  { %721 = vrot.lane.b32.xlu0 %v1608_v23, %s1762_s3  ;;  %v1063_v23 = vld [vmem:[#allocation9 + $0x10] sm:$0xff] }
 0x85a   :  { %v722_v24 = vpop.permute.xlu0 %721 }
 0x85b   :  { %v1927_v25 = vmul.f32 %v1606_v16, %v722_v24  ;;  %v1064_v24 = vld [vmem:[#allocation9 + $0x18] sm:$0xff] }
 0x85d   :  { %v731_v26 = vrot.slane %v1927_v25, 4 }
 0x85f   :  { %732 = vrot.lane.b32.xlu1 %v731_v26, %s1763_s24  ;;  %v1567_v26 = vpack.c.bf16 %v1064_v24, %v1063_v23 }
 0x8d1   :  { %v733_v27 = vpop.permute.xlu1 %732 }
 0x8d2   :  { %1396 = vmatmul.mubr.msk.f32.vlgmr.msra.gmra.mrb[10].mxu1 %vm405_vm2, %v733_v27 }
 0x8d3   :  { %1559 = vmatpush3.bf16.msra.mxu1 %v1865_v48  ;;  %1417 = vmatprep.mubr.msk.f32.mxu1 %vm1760_vm0, %v1761_v62 }
 0x8d4   :  { %1560 = vmatprep.subr.bf16.mxu1 %v1759_v47  ;;  %v818_v47 = vrot.slane %v718_v22, 6 }
 0x8d7   :  { %1562 = vmatpush3.bf16.msra.mxu1 %v1868_v58 }
 0x9a5   :  { %v802_v28 = vpop.f32.mrb[10].mxu1 }
 0x9a6   :  { %v807_v29 = vrot.slane %v802_v28, 2  ;;  %v1397_v31 = vpop.f32.mrb[11].mxu1 }
 0x9a8   :  { %v809_v33 = vadd.f32 %v807_v29, %v1893_v32 }
 0x9aa   :  { %1609 = vtanh.f32 %v809_v33  ;;  %v1181_v35 = vmul.f32 -1.442695, %v809_v33 }
 0x9ac   :  { %1611 = vpow2.f32 %v1181_v35 }
 0x9b4   :  { %v1610_v34 = vpop.eup %1609 }
 0x9b5   :  { %822 = vrot.lane.b32.xlu0 %v1610_v34, %s1762_s3  ;;  %v1186_v34 = vld [vmem:[%s1987_s5] ss:$0 sm:$0xff] }
 0x9b6   :  { %v1612_v36 = vpop.eup %1611 }
 0x9b7   :  { %v813_v48 = vadd.f32 1.0, %v1612_v36 }
 0x9b9   :  { %1613 = vrcp.f32 %v813_v48 }
 0x9c3   :  { %v1614_v37 = vpop.eup %1613 }
 0x9c4   :  { %v820_v58 = vmul.f32 %v1614_v37, %v818_v47 }
 0xa27   :  { %v823_v62 = vpop.permute.xlu0 %822 }
 0xa28   :  { %v825_v38 = vmul.f32 %v1614_v37, %v823_v62 }
 0xa2a   :  { %827 = vrot.lane.b32.xlu1 %v825_v38, %s1763_s24 }
 0xa9c   :  { %v828_v39 = vpop.permute.xlu1 %827 }
 0xa9d   :  { %v830_v40 = vadd.f32 %v828_v39, %v820_v58 }
 0xa9f   :  { %1615 = vtanh.f32 %v830_v40  ;;  %v927_v57 = vrot.slane %v830_v40, 6 }
 0xaa9   :  { %v1616_v32 = vpop.eup %1615 }
 0xaaa   :  { %833 = vrot.lane.b32.xlu0 %v1616_v32, %s1762_s3 }
 0xb1c   :  { %v834_v41 = vpop.permute.xlu0 %833 }
 0xb1d   :  { %v836_v42 = vmul.f32 %v1614_v37, %v834_v41 }
 0xb1f   :  { %v843_v43 = vrot.slane %v836_v42, 6 }
 0xb21   :  { %844 = vrot.lane.b32.xlu1 %v843_v43, %s1763_s24 }
 0xb93   :  { %v845_v44 = vpop.permute.xlu1 %844 }
 0xb94   :  { %1407 = vmatmul.mubr.msk.f32.vlgmr.msra.gmra.mrb[6].mxu0 %vm405_vm2, %v845_v44 }
 0xc67   :  { %v914_v45 = vpop.f32.mrb[6].mxu0 }
 0xc68   :  { %v918_v46 = vadd.f32 %v914_v45, %v1891_v30  ;;  %v1408_v49 = vpop.f32.mrb[7].mxu0 }
 0xc6a   :  { %1617 = vtanh.f32 %v918_v46  ;;  %v1183_v51 = vmul.f32 -1.442695, %v918_v46 }
 0xc6c   :  { %1619 = vpow2.f32 %v1183_v51 }
 0xc74   :  { %v1618_v50 = vpop.eup %1617 }
 0xc75   :  { %931 = vrot.lane.b32.xlu0 %v1618_v50, %s1762_s3 }
 0xc76   :  { %v1620_v52 = vpop.eup %1619 }
 0xc77   :  { %v922_v53 = vadd.f32 1.0, %v1620_v52 }
 0xc79   :  { %1621 = vrcp.f32 %v922_v53 }
 0xc83   :  { %v1622_v54 = vpop.eup %1621 }
 0xc84   :  { %v929_v59 = vmul.f32 %v1622_v54, %v927_v57 }
 0xce7   :  { %v932_v55 = vpop.permute.xlu0 %931 }
 0xce8   :  { %v934_v56 = vmul.f32 %v1622_v54, %v932_v55 }
 0xcea   :  { %936 = vrot.lane.b32.xlu1 %v934_v56, %s1763_s24 }
 0xd5c   :  { %v937_v60 = vpop.permute.xlu1 %936 }
 0xd5d   :  { %v939_v61 = vadd.f32 %v937_v60, %v929_v59 }
 0xd5f   :  { %1623 = vtanh.f32 %v939_v61 }
 0xd69   :  { %v1624_v63 = vpop.eup %1623 }
 0xd6a   :  { %942 = vrot.lane.b32.xlu0 %v1624_v63, %s1762_s3 }
 0xddc   :  { %v943_v0 = vpop.permute.xlu0 %942 }
 0xddd   :  { %v945_v1 = vmul.f32 %v1622_v54, %v943_v0 }
 0xddf   :  { %947 = vrot.lane.b32.xlu1 %v945_v1, %s1763_s24 }
 0xe51   :  { %v948_v2 = vpop.permute.xlu1 %947 }
 0xe52   :  { %950 = vst.msk [vmem:[#allocation2 + $0x8] sm:$0x3] %vm508_vm1, %v948_v2  ;;  %1418 = vmatmul.mubr.msk.f32.vlgmr.msra.gmra.mrb[12].mxu1 %vm405_vm2, %v948_v2 }
 0xf25   :  { %v1019_v3 = vpop.f32.mrb[12].mxu1 }
 0xf26   :  { %v1024_v4 = vrot.slane %v1019_v3, 6  ;;  %v1419_v6 = vpop.f32.mrb[13].mxu1 }
 0xf28   :  { %v1026_v7 = vadd.f32 %v1024_v4, %v1891_v30  ;;  %v1035_v30 = vrot.slane %v939_v61, 6 }
 0xf2a   :  { %1625 = vtanh.f32 %v1026_v7  ;;  %v1185_v9 = vmul.f32 -1.442695, %v1026_v7 }
 0xf2c   :  { %1627 = vpow2.f32 %v1185_v9 }
 0xf34   :  { %v1626_v8 = vpop.eup %1625 }
 0xf35   :  { %1039 = vrot.lane.b32.xlu0 %v1626_v8, %s1762_s3 }
 0xf36   :  { %v1628_v10 = vpop.eup %1627 }
 0xf37   :  { %v1030_v11 = vadd.f32 1.0, %v1628_v10 }
 0xf39   :  { %1629 = vrcp.f32 %v1030_v11 }
 0xf43   :  { %v1630_v12 = vpop.eup %1629 }
 0xf44   :  { %v1037_v15 = vmul.f32 %v1630_v12, %v1035_v30 }
 0xfa7   :  { %v1040_v13 = vpop.permute.xlu0 %1039 }
 0xfa8   :  { %v1042_v14 = vmul.f32 %v1630_v12, %v1040_v13 }
 0xfaa   :  { %1044 = vrot.lane.b32.xlu1 %v1042_v14, %s1763_s24 }
 0xfae   :  { %614 = vrot.lane.b32.xlu1 %v1912_v5, %s1763_s24  ;;  %v1061_v5 = vld [vmem:[#allocation9] sm:$0xff] }
 0xfaf   :  { %v1563_v22 = vpack.c.bf16 %v1062_v21, %v1061_v5 }
 0xfb1   :  { %1564 = vmatprep.subr.bf16.mxu0 %v1563_v22 }
 0xfb2   :  { %838 = vrot.lane.b32.xlu1 %v836_v42, %s1763_s24  ;;  %1566 = vmatpush3.bf16.msra.mxu0 %v1563_v22 }
 0xfb3   :  { %1568 = vmatprep.subr.bf16.mxu0 %v1567_v26 }
 0xfb6   :  { %1570 = vmatpush3.bf16.msra.mxu0 %v1567_v26 }
0x101c   :  { %v1045_v16 = vpop.permute.xlu1 %1044 }
0x101d   :  { %v1047_v17 = vadd.f32 %v1045_v16, %v1037_v15 }
0x101f   :  { %1631 = vtanh.f32 %v1047_v17 }
0x1020   :  { %v615_v18 = vpop.permute.xlu1 %614 }
0x1021   :  { %618 = vst.msk [vmem:[#allocation2] sm:$0xc] %vm617_vm3, %v615_v18 }
0x1024   :  { %v839_v19 = vpop.permute.xlu1 %838 }
0x1025   :  { %842 = vst.msk [vmem:[#allocation2] sm:$0xc0] %vm841_vm4, %v839_v19 }
0x1029   :  { %v1632_v20 = vpop.eup %1631 }
0x102a   :  { %1050 = vrot.lane.b32.xlu0 %v1632_v20, %s1762_s3 }
0x102e   :  { %726 = vrot.lane.b32.xlu0 %v1927_v25, %s1763_s24 }
0x109c   :  { %v1051_v27 = vpop.permute.xlu0 %1050 }
0x109d   :  { %v1053_v28 = vmul.f32 %v1630_v12, %v1051_v27 }
0x109f   :  { %1055 = vrot.lane.b32.xlu0 %v1053_v28, %s1763_s24 }
0x10a0   :  { %v727_v29 = vpop.permute.xlu0 %726 }
0x10a1   :  { %730 = vst.msk [vmem:[#allocation2] sm:$0x30] %vm729_vm5, %v727_v29 }
0x10a8   :  { %v1059_v31 = vld [vmem:[#allocation2] sm:$0xff] }
0x10a9   :  { %1428 = vmatprep.mubr.msk.f32.mxu0 %vm405_vm2, %v1059_v31 }
0x1111   :  { %v1056_v25 = vpop.permute.xlu0 %1055 }
0x1112   :  { %1058 = vst.msk [vmem:[#allocation2 + $0x8] sm:$0xc] %vm617_vm3, %v1056_v25 }
0x1119   :  { %v1060_v33 = vld [vmem:[#allocation2 + $0x8] sm:$0xf] }
0x111a   :  { %1429 = vmatmul.mubr.msk.f32.vlgmr.msra.gmra.mrb[8].mxu0 %vm405_vm2, %v1060_v33 }
0x11ed   :  { %v1430_v35 = vpop.f32.mrb[8].mxu0 }
0x11ee   :  { %v1150_v36 = vadd.f32 %v1430_v35, %v1186_v34  ;;  %v1144_v48 = vpop.f32.mrb[9].mxu0 }
0x11ef   :  { %v1145_v37 = vadd.f32 %v1186_v34, %v1144_v48 }
0x11f0   :  { %1154 = vst [vmem:[#allocation11 + $0x8] sm:$0xf] %v1150_v36 }
0x11f1   :  { %1153 = vst [vmem:[#allocation11] sm:$0xff] %v1145_v37 }
0x11f2   :  { %1732 = shalt.err (!%p1729_p8)
}
0x11f3   :  { %s1733_s5 = scalar_lea.hbm %s1988_s6, 256 }
0x11f4   :  { %p1734_p9 = scmp.ne.s32.totalorder %s1988_s6, %s1733_s5  ;;  %p1737_p10 = scmp.lt.u32.totalorder %s1733_s5, %s1988_s6 }
0x11f6   :  { %p1739_p11 = pnand %p1737_p10, %p1734_p9 }
0x11f8   :  { %1742 = shalt.err (!%p1739_p11)
}
0x11f9   :  { %1166 = dma.vmem_to_hbm [thread:$0]  %s1161_s28, 256, %s1988_s6, [#allocation5], %s1752_s7, %s1752_s7, %s1753_s8  }
0x11fa   :  { %1749 = dma.done.wait [#allocation5], 256  }
0x11fb   :  { %1750 = vsyncadd [#allocation5], 4294967040 }
0x11fc   :  { %1170 = vsyncpa [#allocation4], 1 }
0x11fd   :  { %1171 = vsyncpa [#allocation7], 1 }
0x11fe   :  { %1172 = vsyncpa [#allocation10], 1 }
0x11ff   :  { %1173 = vsyncpa [#allocation5], 1 }

</bundles_post_ra>
